<compile_context>
chip_gen: v7x
topology: tpu7x:2x2x1
jax: 0.10.0
libtpu: 0.0.40
codegen_flags: <defaults>
</compile_context>

<pallas_src>
import numpy as np
import jax
import jax.numpy as jnp
from jax import lax
from jax.experimental import pallas as pl
from jax.experimental.pallas import tpu as pltpu


def _net_kernel(xp_ref, m1_ref, b1_ref, m2_ref, b2_ref, mf_ref,
                fb1_ref, fw2_ref, fb2_ref, out_ref):
    # xp_ref:  [N, H+2, W]        input with zero rows top/bottom (padded in XLA)
    # m1_ref:  [3, W, 2*W2*C1]    conv1 row-window matrices (even|odd pooled-w)
    # b1_ref:  [1, W2*C1]
    # m2_ref:  [3, W2*C1, 256]    conv2 row-window matrices, even block in lanes
    #                             [0:128), odd block in lanes [128:256) (padded)
    # b2_ref:  [1, 128]           (W4*C2 valid lanes, rest zero)
    # mf_ref:  [H4, 128, HID]     fc1 blocks (PyTorch NCHW flatten folded in)
    # fw2_ref: [HID, 128], fb1/fb2: [1, HID] / [1, 128]
    N, HP, W = xp_ref.shape
    H = HP - 2
    NH = N * H
    WC = m1_ref.shape[2]          # 2 * W2 * C1
    PC = WC // 2                  # W2 * C1   (pooled-1 packed lane width)
    LANES = fw2_ref.shape[1]      # 128
    H4 = mf_ref.shape[0]

    # ---------------- conv1: 3 contiguous row-window matmuls ------------------
    z1 = None
    for ky in range(3):
        rows = xp_ref[:, ky:ky + H, :].reshape(NH, W)        # [N*H, W]
        d = jnp.dot(rows, m1_ref[ky], preferred_element_type=jnp.float32)
        z1 = d if z1 is None else z1 + d
    # pool1: W-parity is folded into the weight columns -> 128-aligned slice
    # max; H-pool is a sublane roll + max (valid rows r = n*H + 2*h2).
    z1 = jnp.maximum(z1[:, :PC], z1[:, PC:])                  # [N*H, PC]
    z1 = jnp.maximum(z1, pltpu.roll(z1, NH - 1, 0))           # max(row, row+1)
    a1 = jnp.tanh(z1 + b1_ref[...])                           # pooled-1 activ.

    # ---------------- conv2: ky windows via sublane rolls + boundary masks ----
    rmod = lax.broadcasted_iota(jnp.int32, (N, H, PC), 1).reshape(NH, PC)
    win0 = jnp.where(rmod >= 2, pltpu.roll(a1, 2, 0), 0.0)        # row r-2
    win2 = jnp.where(rmod < H - 2, pltpu.roll(a1, NH - 2, 0), 0.0)  # row r+2
    z2 = None
    for ky, wnd in enumerate((win0, a1, win2)):
        d = jnp.dot(wnd, m2_ref[ky], preferred_element_type=jnp.float32)
        z2 = d if z2 is None else z2 + d
    # pool2: 128-aligned lane-half max (W) + roll-by-2 max (H).
    # Valid pooled-2 rows are r = n*H + 4*h4.
    z2 = jnp.maximum(z2[:, :LANES], z2[:, LANES:])            # [N*H, 128]
    z2 = jnp.maximum(z2, pltpu.roll(z2, NH - 2, 0))
    a2 = jnp.tanh(z2 + b2_ref[...])                           # pooled-2 activ.

    # ---------------- fc1: one block matmul per pooled row h4 -----------------
    # A roll by -4*h4 aligns pooled row h4 of every sample onto row n*H, so the
    # accumulated result is valid at rows n*H (no gather / no scratch needed).
    acc = None
    for h4 in range(H4):
        wnd = a2 if h4 == 0 else pltpu.roll(a2, NH - 4 * h4, 0)
        d = jnp.dot(wnd, mf_ref[h4], preferred_element_type=jnp.float32)
        acc = d if acc is None else acc + d
    hidden = jnp.tanh(acc + fb1_ref[...])                     # rows n*H valid

    # ---------------- fc2 into a lane-dense, aligned [N*H, 128] slab ----------
    out_ref[...] = jnp.dot(hidden, fw2_ref[...],
                           preferred_element_type=jnp.float32) + fb2_ref[...]


def net_forward(x_nchw, kparams):
    """x_nchw: [N, 1, H, W] float32 (PyTorch layout). Returns [N, 10] logits."""
    m1, b1r, m2, b2r, mf, fb1, fw2p, fb2p = kparams
    N, _, H, W = x_nchw.shape
    LANES = fw2p.shape[1]
    x = x_nchw.reshape(N, H, W).astype(jnp.float32)
    xp = jnp.pad(x, ((0, 0), (1, 1), (0, 0)))                 # H halo in XLA

    vmem = lambda: pl.BlockSpec(memory_space=pltpu.MemorySpace.VMEM)
    out_full = pl.pallas_call(
        _net_kernel,
        out_shape=jax.ShapeDtypeStruct((N * H, LANES), jnp.float32),
        in_specs=[vmem() for _ in range(9)],
        out_specs=vmem(),
    )(xp, m1, b1r, m2, b2r, mf, fb1, fw2p, fb2p)
    # Valid logits live at row n*H, lanes 0..9; extract outside the kernel.
    return out_full.reshape(N, H, LANES)[:, 0, :10]


def init_pt_params(height, width, key):
    """Deterministic parameters in *PyTorch* shapes (see Net.__init__)."""
    h4, w4 = height // 4, width // 4
    feat = 8 * h4 * w4
    ks = jax.random.split(key, 8)
    sc = 0.1
    return dict(
        w1=sc * jax.random.normal(ks[0], (16, 1, 3, 3), jnp.float32),
        b1=sc * jax.random.normal(ks[1], (16,), jnp.float32),
        w2=sc * jax.random.normal(ks[2], (8, 16, 3, 3), jnp.float32),
        b2=sc * jax.random.normal(ks[3], (8,), jnp.float32),
        fc1_w=sc * jax.random.normal(ks[4], (32, feat), jnp.float32),
        fc1_b=sc * jax.random.normal(ks[5], (32,), jnp.float32),
        fc2_w=sc * jax.random.normal(ks[6], (10, 32), jnp.float32),
        fc2_b=sc * jax.random.normal(ks[7], (10,), jnp.float32),
    )


def to_kernel_params(p, height, width):
    """One-time host-side repack of the PyTorch weights into the matmul
    operands the kernel consumes.  Column halos of the 3x3 convs are handled
    by omitting out-of-range taps; row halos use the XLA-padded input /
    masked rolls.  Max-pool W-parities are folded into the weight columns."""
    H, W = height, width
    W2, H4, W4 = W // 2, H // 4, W // 4
    C1, C2, HID, OUT = 16, 8, 32, 10
    LANES = 128

    w1 = np.asarray(p["w1"])      # [C1, 1, 3, 3]   (O, I, ky, kx)
    w2 = np.asarray(p["w2"])      # [C2, C1, 3, 3]
    f1 = np.asarray(p["fc1_w"])   # [HID, C2*H4*W4]

    # conv1 row-window matrix: column = dw*(W2*C1) + wo*C1 + c1, so the W-pool
    # is a 128-aligned lane-half max afterwards.
    m1 = np.zeros((3, W, 2 * W2 * C1), np.float32)
    for ky in range(3):
        for dw in range(2):
            for wo in range(W2):
                for kx in range(3):
                    t = 2 * wo + dw + kx - 1
                    if 0 <= t < W:
                        col = dw * W2 * C1 + wo * C1
                        m1[ky, t, col:col + C1] = w1[:, 0, ky, kx]

    # conv2 row-window matrices; even/odd pooled-w halves padded to 128-lane
    # blocks (column = dw*128 + wo*C2 + c2) so the W-pool is a 128-aligned max.
    PC = W2 * C1
    m2 = np.zeros((3, PC, 2 * LANES), np.float32)
    for ky in range(3):
        for dw in range(2):
            for wo in range(W4):
                for kx in range(3):
                    t = 2 * wo + dw + kx - 1
                    if 0 <= t < W2:
                        for c1 in range(C1):
                            base = dw * LANES + wo * C2
                            m2[ky, t * C1 + c1, base:base + C2] = w2[:, c1, ky, kx]

    # fc1: one [128, HID] block per pooled row h4 (rows >= W4*C2 are zero),
    # reproducing PyTorch's NCHW flatten order (k = c2*H4*W4 + h4*W4 + w4).
    mf = np.zeros((H4, LANES, HID), np.float32)
    for h4 in range(H4):
        for w4 in range(W4):
            for c2 in range(C2):
                mf[h4, w4 * C2 + c2, :] = f1[:, c2 * H4 * W4 + h4 * W4 + w4]

    b1r = np.tile(np.asarray(p["b1"]), W2).reshape(1, W2 * C1)
    b2r = np.zeros((1, LANES), np.float32)
    b2r[0, :W4 * C2] = np.tile(np.asarray(p["b2"]), W4)

    fw2p = np.zeros((HID, LANES), np.float32)                 # lane-dense fc2
    fw2p[:, :OUT] = np.asarray(p["fc2_w"]).T
    fb2p = np.zeros((1, LANES), np.float32)
    fb2p[0, :OUT] = np.asarray(p["fc2_b"])

    return (jnp.asarray(m1), jnp.asarray(b1r),
            jnp.asarray(m2), jnp.asarray(b2r),
            jnp.asarray(mf),
            jnp.asarray(p["fc1_b"]).reshape(1, HID),
            jnp.asarray(fw2p), jnp.asarray(fb2p))


def net_forward_ref(x_nchw, p):
    """Plain-JAX replica of the PyTorch forward (NCHW), for verification."""
    def conv(x, w, b):
        y = lax.conv_general_dilated(
            x, w, (1, 1), [(1, 1), (1, 1)],
            dimension_numbers=("NCHW", "OIHW", "NCHW"))
        return y + b[None, :, None, None]

    def pool(x):
        return lax.reduce_window(x, -jnp.inf, lax.max,
                                 (1, 1, 2, 2), (1, 1, 2, 2), "VALID")

    out = pool(jnp.tanh(conv(x_nchw, p["w1"], p["b1"])))
    out = pool(jnp.tanh(conv(out, p["w2"], p["b2"])))
    out = out.reshape(out.shape[0], -1)                        # NCHW flatten
    out = jnp.tanh(out @ p["fc1_w"].T + p["fc1_b"])
    return out @ p["fc2_w"].T + p["fc2_b"]


if __name__ == "__main__":
    HEIGHT = WIDTH = 16   # -> fc1 input = 8 * 4 * 4 = 128
    BATCH = 2

    key = jax.random.PRNGKey(0)
    kx_, kp_ = jax.random.split(key)
    x = jax.random.normal(kx_, (BATCH, 1, HEIGHT, WIDTH), jnp.float32)  # NCHW

    pt_params = init_pt_params(HEIGHT, WIDTH, kp_)
    kparams = to_kernel_params(pt_params, HEIGHT, WIDTH)   # one-time host repack

    out = jax.jit(net_forward)(x, kparams)
    out = jax.block_until_ready(out)

    ref = net_forward_ref(x, pt_params)
    assert out.shape == (BATCH, 10) and out.dtype == jnp.float32
    # tolerance allows for differing f32 MXU accumulation orders between the
    # fused kernel and the XLA reference; real layout/index bugs are O(1e-1).
    assert jnp.allclose(out, ref, atol=1e-3, rtol=1e-3), (out, ref)
    print("KERNEL_OK")
</pallas_src>

<mosaic_0001>
module attributes {stable_mosaic.version = 11 : i64} {
  func.func @_net_kernel(%arg0: memref<2x18x16xf32, #tpu.memory_space<vmem>>, %arg1: memref<3x16x256xf32, #tpu.memory_space<vmem>>, %arg2: memref<1x128xf32, #tpu.memory_space<vmem>>, %arg3: memref<3x128x256xf32, #tpu.memory_space<vmem>>, %arg4: memref<1x128xf32, #tpu.memory_space<vmem>>, %arg5: memref<4x128x32xf32, #tpu.memory_space<vmem>>, %arg6: memref<1x32xf32, #tpu.memory_space<vmem>>, %arg7: memref<32x128xf32, #tpu.memory_space<vmem>>, %arg8: memref<1x128xf32, #tpu.memory_space<vmem>>, %arg9: memref<32x128xf32, #tpu.memory_space<vmem>>) attributes {dimension_semantics = [], scalar_prefetch = 0 : i64, scratch_operands = 0 : i64, tpu.core_type = #tpu.core_type<tc>} {
    %c0 = arith.constant 0 : index
    %c0_0 = arith.constant 0 : index
    %c0_1 = arith.constant 0 : index
    %0 = vector.load %arg0[%c0, %c0_0, %c0_1] : memref<2x18x16xf32, #tpu.memory_space<vmem>>, vector<2x16x16xf32>
    %1 = vector.shape_cast %0 : vector<2x16x16xf32> to vector<32x16xf32>
    %c0_2 = arith.constant 0 : index
    %c0_3 = arith.constant 0 : index
    %c0_4 = arith.constant 0 : index
    %2 = vector.load %arg1[%c0_2, %c0_3, %c0_4] : memref<3x16x256xf32, #tpu.memory_space<vmem>>, vector<1x16x256xf32>
    %3 = vector.shape_cast %2 : vector<1x16x256xf32> to vector<16x256xf32>
    %cst = arith.constant dense<0.000000e+00> : vector<32x256xf32>
    %4 = tpu.matmul %1, %3, %cst {dimension_numbers = #tpu.dot_dimension_numbers<[1], [0], [0], [1], [0, 0, 1, 1], [], []>} : vector<32x16xf32>, vector<16x256xf32>, vector<32x256xf32> -> vector<32x256xf32>
    %c0_5 = arith.constant 0 : index
    %c1 = arith.constant 1 : index
    %c0_6 = arith.constant 0 : index
    %5 = vector.load %arg0[%c0_5, %c1, %c0_6] : memref<2x18x16xf32, #tpu.memory_space<vmem>>, vector<2x16x16xf32>
    %6 = vector.shape_cast %5 : vector<2x16x16xf32> to vector<32x16xf32>
    %c1_7 = arith.constant 1 : index
    %c0_8 = arith.constant 0 : index
    %c0_9 = arith.constant 0 : index
    %7 = vector.load %arg1[%c1_7, %c0_8, %c0_9] : memref<3x16x256xf32, #tpu.memory_space<vmem>>, vector<1x16x256xf32>
    %8 = vector.shape_cast %7 : vector<1x16x256xf32> to vector<16x256xf32>
    %cst_10 = arith.constant dense<0.000000e+00> : vector<32x256xf32>
    %9 = tpu.matmul %6, %8, %cst_10 {dimension_numbers = #tpu.dot_dimension_numbers<[1], [0], [0], [1], [0, 0, 1, 1], [], []>} : vector<32x16xf32>, vector<16x256xf32>, vector<32x256xf32> -> vector<32x256xf32>
    %10 = arith.addf %4, %9 : vector<32x256xf32>
    %c0_11 = arith.constant 0 : index
    %c2 = arith.constant 2 : index
    %c0_12 = arith.constant 0 : index
    %11 = vector.load %arg0[%c0_11, %c2, %c0_12] : memref<2x18x16xf32, #tpu.memory_space<vmem>>, vector<2x16x16xf32>
    %12 = vector.shape_cast %11 : vector<2x16x16xf32> to vector<32x16xf32>
    %c2_13 = arith.constant 2 : index
    %c0_14 = arith.constant 0 : index
    %c0_15 = arith.constant 0 : index
    %13 = vector.load %arg1[%c2_13, %c0_14, %c0_15] : memref<3x16x256xf32, #tpu.memory_space<vmem>>, vector<1x16x256xf32>
    %14 = vector.shape_cast %13 : vector<1x16x256xf32> to vector<16x256xf32>
    %cst_16 = arith.constant dense<0.000000e+00> : vector<32x256xf32>
    %15 = tpu.matmul %12, %14, %cst_16 {dimension_numbers = #tpu.dot_dimension_numbers<[1], [0], [0], [1], [0, 0, 1, 1], [], []>} : vector<32x16xf32>, vector<16x256xf32>, vector<32x256xf32> -> vector<32x256xf32>
    %16 = arith.addf %10, %15 : vector<32x256xf32>
    %17 = vector.extract_strided_slice %16 {offsets = [0, 0], sizes = [32, 128], strides = [1, 1]} : vector<32x256xf32> to vector<32x128xf32>
    %18 = vector.extract_strided_slice %16 {offsets = [0, 128], sizes = [32, 128], strides = [1, 1]} : vector<32x256xf32> to vector<32x128xf32>
    %19 = arith.maximumf %17, %18 : vector<32x128xf32>
    %c31_i32 = arith.constant 31 : i32
    %20 = tpu.dynamic_rotate %19 by %c31_i32 dim 0 : vector<32x128xf32>, i32 -> vector<32x128xf32>
    %21 = arith.maximumf %19, %20 : vector<32x128xf32>
    %c0_17 = arith.constant 0 : index
    %c0_18 = arith.constant 0 : index
    %22 = vector.load %arg2[%c0_17, %c0_18] : memref<1x128xf32, #tpu.memory_space<vmem>>, vector<1x128xf32>
    %23 = vector.broadcast %22 : vector<1x128xf32> to vector<32x128xf32>
    %24 = arith.addf %21, %23 : vector<32x128xf32>
    %25 = math.tanh %24 : vector<32x128xf32>
    %26 = tpu.iota {dimensions = array<i32: 1>} : vector<2x16x128xi32>
    %27 = vector.shape_cast %26 : vector<2x16x128xi32> to vector<32x128xi32>
    %c2_i32 = arith.constant 2 : i32
    %28 = vector.broadcast %c2_i32 : i32 to vector<32x128xi32>
    %29 = arith.cmpi sge, %27, %28 : vector<32x128xi32>
    %c2_i32_19 = arith.constant 2 : i32
    %30 = tpu.dynamic_rotate %25 by %c2_i32_19 dim 0 : vector<32x128xf32>, i32 -> vector<32x128xf32>
    %cst_20 = arith.constant 0.000000e+00 : f32
    %31 = vector.broadcast %cst_20 : f32 to vector<32x128xf32>
    %32 = arith.select %29, %30, %31 : vector<32x128xi1>, vector<32x128xf32>
    %c14_i32 = arith.constant 14 : i32
    %33 = vector.broadcast %c14_i32 : i32 to vector<32x128xi32>
    %34 = arith.cmpi slt, %27, %33 : vector<32x128xi32>
    %c30_i32 = arith.constant 30 : i32
    %35 = tpu.dynamic_rotate %25 by %c30_i32 dim 0 : vector<32x128xf32>, i32 -> vector<32x128xf32>
    %cst_21 = arith.constant 0.000000e+00 : f32
    %36 = vector.broadcast %cst_21 : f32 to vector<32x128xf32>
    %37 = arith.select %34, %35, %36 : vector<32x128xi1>, vector<32x128xf32>
    %c0_22 = arith.constant 0 : index
    %c0_23 = arith.constant 0 : index
    %c0_24 = arith.constant 0 : index
    %38 = vector.load %arg3[%c0_22, %c0_23, %c0_24] : memref<3x128x256xf32, #tpu.memory_space<vmem>>, vector<1x128x256xf32>
    %39 = vector.shape_cast %38 : vector<1x128x256xf32> to vector<128x256xf32>
    %cst_25 = arith.constant dense<0.000000e+00> : vector<32x256xf32>
    %40 = tpu.matmul %32, %39, %cst_25 {dimension_numbers = #tpu.dot_dimension_numbers<[1], [0], [0], [1], [0, 0, 1, 1], [], []>} : vector<32x128xf32>, vector<128x256xf32>, vector<32x256xf32> -> vector<32x256xf32>
    %c1_26 = arith.constant 1 : index
    %c0_27 = arith.constant 0 : index
    %c0_28 = arith.constant 0 : index
    %41 = vector.load %arg3[%c1_26, %c0_27, %c0_28] : memref<3x128x256xf32, #tpu.memory_space<vmem>>, vector<1x128x256xf32>
    %42 = vector.shape_cast %41 : vector<1x128x256xf32> to vector<128x256xf32>
    %cst_29 = arith.constant dense<0.000000e+00> : vector<32x256xf32>
    %43 = tpu.matmul %25, %42, %cst_29 {dimension_numbers = #tpu.dot_dimension_numbers<[1], [0], [0], [1], [0, 0, 1, 1], [], []>} : vector<32x128xf32>, vector<128x256xf32>, vector<32x256xf32> -> vector<32x256xf32>
    %44 = arith.addf %40, %43 : vector<32x256xf32>
    %c2_30 = arith.constant 2 : index
    %c0_31 = arith.constant 0 : index
    %c0_32 = arith.constant 0 : index
    %45 = vector.load %arg3[%c2_30, %c0_31, %c0_32] : memref<3x128x256xf32, #tpu.memory_space<vmem>>, vector<1x128x256xf32>
    %46 = vector.shape_cast %45 : vector<1x128x256xf32> to vector<128x256xf32>
    %cst_33 = arith.constant dense<0.000000e+00> : vector<32x256xf32>
    %47 = tpu.matmul %37, %46, %cst_33 {dimension_numbers = #tpu.dot_dimension_numbers<[1], [0], [0], [1], [0, 0, 1, 1], [], []>} : vector<32x128xf32>, vector<128x256xf32>, vector<32x256xf32> -> vector<32x256xf32>
    %48 = arith.addf %44, %47 : vector<32x256xf32>
    %49 = vector.extract_strided_slice %48 {offsets = [0, 0], sizes = [32, 128], strides = [1, 1]} : vector<32x256xf32> to vector<32x128xf32>
    %50 = vector.extract_strided_slice %48 {offsets = [0, 128], sizes = [32, 128], strides = [1, 1]} : vector<32x256xf32> to vector<32x128xf32>
    %51 = arith.maximumf %49, %50 : vector<32x128xf32>
    %c30_i32_34 = arith.constant 30 : i32
    %52 = tpu.dynamic_rotate %51 by %c30_i32_34 dim 0 : vector<32x128xf32>, i32 -> vector<32x128xf32>
    %53 = arith.maximumf %51, %52 : vector<32x128xf32>
    %c0_35 = arith.constant 0 : index
    %c0_36 = arith.constant 0 : index
    %54 = vector.load %arg4[%c0_35, %c0_36] : memref<1x128xf32, #tpu.memory_space<vmem>>, vector<1x128xf32>
    %55 = vector.broadcast %54 : vector<1x128xf32> to vector<32x128xf32>
    %56 = arith.addf %53, %55 : vector<32x128xf32>
    %57 = math.tanh %56 : vector<32x128xf32>
    %c0_37 = arith.constant 0 : index
    %c0_38 = arith.constant 0 : index
    %c0_39 = arith.constant 0 : index
    %58 = vector.load %arg5[%c0_37, %c0_38, %c0_39] : memref<4x128x32xf32, #tpu.memory_space<vmem>>, vector<1x128x32xf32>
    %59 = vector.shape_cast %58 : vector<1x128x32xf32> to vector<128x32xf32>
    %cst_40 = arith.constant dense<0.000000e+00> : vector<32x32xf32>
    %60 = tpu.matmul %57, %59, %cst_40 {dimension_numbers = #tpu.dot_dimension_numbers<[1], [0], [0], [1], [0, 0, 1, 1], [], []>} : vector<32x128xf32>, vector<128x32xf32>, vector<32x32xf32> -> vector<32x32xf32>
    %c28_i32 = arith.constant 28 : i32
    %61 = tpu.dynamic_rotate %57 by %c28_i32 dim 0 : vector<32x128xf32>, i32 -> vector<32x128xf32>
    %c1_41 = arith.constant 1 : index
    %c0_42 = arith.constant 0 : index
    %c0_43 = arith.constant 0 : index
    %62 = vector.load %arg5[%c1_41, %c0_42, %c0_43] : memref<4x128x32xf32, #tpu.memory_space<vmem>>, vector<1x128x32xf32>
    %63 = vector.shape_cast %62 : vector<1x128x32xf32> to vector<128x32xf32>
    %cst_44 = arith.constant dense<0.000000e+00> : vector<32x32xf32>
    %64 = tpu.matmul %61, %63, %cst_44 {dimension_numbers = #tpu.dot_dimension_numbers<[1], [0], [0], [1], [0, 0, 1, 1], [], []>} : vector<32x128xf32>, vector<128x32xf32>, vector<32x32xf32> -> vector<32x32xf32>
    %65 = arith.addf %60, %64 : vector<32x32xf32>
    %c24_i32 = arith.constant 24 : i32
    %66 = tpu.dynamic_rotate %57 by %c24_i32 dim 0 : vector<32x128xf32>, i32 -> vector<32x128xf32>
    %c2_45 = arith.constant 2 : index
    %c0_46 = arith.constant 0 : index
    %c0_47 = arith.constant 0 : index
    %67 = vector.load %arg5[%c2_45, %c0_46, %c0_47] : memref<4x128x32xf32, #tpu.memory_space<vmem>>, vector<1x128x32xf32>
    %68 = vector.shape_cast %67 : vector<1x128x32xf32> to vector<128x32xf32>
    %cst_48 = arith.constant dense<0.000000e+00> : vector<32x32xf32>
    %69 = tpu.matmul %66, %68, %cst_48 {dimension_numbers = #tpu.dot_dimension_numbers<[1], [0], [0], [1], [0, 0, 1, 1], [], []>} : vector<32x128xf32>, vector<128x32xf32>, vector<32x32xf32> -> vector<32x32xf32>
    %70 = arith.addf %65, %69 : vector<32x32xf32>
    %c20_i32 = arith.constant 20 : i32
    %71 = tpu.dynamic_rotate %57 by %c20_i32 dim 0 : vector<32x128xf32>, i32 -> vector<32x128xf32>
    %c3 = arith.constant 3 : index
    %c0_49 = arith.constant 0 : index
    %c0_50 = arith.constant 0 : index
    %72 = vector.load %arg5[%c3, %c0_49, %c0_50] : memref<4x128x32xf32, #tpu.memory_space<vmem>>, vector<1x128x32xf32>
    %73 = vector.shape_cast %72 : vector<1x128x32xf32> to vector<128x32xf32>
    %cst_51 = arith.constant dense<0.000000e+00> : vector<32x32xf32>
    %74 = tpu.matmul %71, %73, %cst_51 {dimension_numbers = #tpu.dot_dimension_numbers<[1], [0], [0], [1], [0, 0, 1, 1], [], []>} : vector<32x128xf32>, vector<128x32xf32>, vector<32x32xf32> -> vector<32x32xf32>
    %75 = arith.addf %70, %74 : vector<32x32xf32>
    %c0_52 = arith.constant 0 : index
    %c0_53 = arith.constant 0 : index
    %76 = vector.load %arg6[%c0_52, %c0_53] : memref<1x32xf32, #tpu.memory_space<vmem>>, vector<1x32xf32>
    %77 = vector.broadcast %76 : vector<1x32xf32> to vector<32x32xf32>
    %78 = arith.addf %75, %77 : vector<32x32xf32>
    %79 = math.tanh %78 : vector<32x32xf32>
    %c0_54 = arith.constant 0 : index
    %c0_55 = arith.constant 0 : index
    %80 = vector.load %arg7[%c0_54, %c0_55] : memref<32x128xf32, #tpu.memory_space<vmem>>, vector<32x128xf32>
    %cst_56 = arith.constant dense<0.000000e+00> : vector<32x128xf32>
    %81 = tpu.matmul %79, %80, %cst_56 {dimension_numbers = #tpu.dot_dimension_numbers<[1], [0], [0], [1], [0, 0, 1, 1], [], []>} : vector<32x32xf32>, vector<32x128xf32>, vector<32x128xf32> -> vector<32x128xf32>
    %c0_57 = arith.constant 0 : index
    %c0_58 = arith.constant 0 : index
    %82 = vector.load %arg8[%c0_57, %c0_58] : memref<1x128xf32, #tpu.memory_space<vmem>>, vector<1x128xf32>
    %83 = vector.broadcast %82 : vector<1x128xf32> to vector<32x128xf32>
    %84 = arith.addf %81, %83 : vector<32x128xf32>
    %c0_59 = arith.constant 0 : index
    %c0_60 = arith.constant 0 : index
    %85 = vector.load %arg9[%c0_59, %c0_60] : memref<32x128xf32, #tpu.memory_space<vmem>>, vector<32x128xf32>
    tpu.vector_store %arg9[%c0_59, %c0_60], %84 {strides = array<i32>} : memref<32x128xf32, #tpu.memory_space<vmem>>, vector<32x128xf32>,
    return
  }
}

</mosaic_0001>

<bundles_post_ra>
// kernel: net_forward.1
= control target key start
LH: loop header
LB: loop body
LE: loop exit
PB: predicated region body
PF: predicated region fallthrough
CT: control target
= control target key end

     0   :  { %14 = vsyncpa [#allocation3], 0  ;;  %s2084_s30 = smov [#allocation2]   ;;  %s2576_s0 = inlined_call_operand.vmem [shape: f32[2,18,16], index: 0, kind: input, shape index: {}]   ;;  %s2577_s1 = inlined_call_operand.vmem [shape: f32[3,16,256], index: 1, kind: input, shape index: {}]   ;;  %s2578_s2 = inlined_call_operand.vmem [shape: f32[1,128], index: 2, kind: input, shape index: {}]   ;;  %s2579_s3 = inlined_call_operand.hbm [shape: f32[3,128,256], index: 3, kind: input, shape index: {}]   ;;  %s2580_s4 = inlined_call_operand.vmem [shape: f32[1,128], index: 4, kind: input, shape index: {}]   ;;  %s2581_s5 = inlined_call_operand.vmem [shape: f32[4,128,32], index: 5, kind: input, shape index: {}]   ;;  %s2582_s6 = inlined_call_operand.vmem [shape: f32[1,32], index: 6, kind: input, shape index: {}]   ;;  %s2583_s7 = inlined_call_operand.vmem [shape: f32[32,128], index: 7, kind: input, shape index: {}]   ;;  %s2584_s8 = inlined_call_operand.vmem [shape: f32[1,128], index: 8, kind: input, shape index: {}]   ;;  %s2585_s9 = inlined_call_operand.vmem [shape: f32[32,128], index: 9, kind: output, shape index: {}]  }
   0x1   :  { %s26_s10 = sshll.u32 %s2084_s30, 4  ;;  %s2060_s13 = scalar_lea.hbm %s2579_s3, 12288  ;;  %s27_s10 = int_to_ptr.vmem [resolvable:$true] %s26_s10 }
   0x2   :  { %p2061_p0 = scmp.ne.s32.totalorder %s2579_s3, %s2060_s13  ;;  %p2064_p1 = scmp.lt.u32.totalorder %s2060_s13, %s2579_s3 }
   0x4   :  { %p2066_p2 = pnand %p2064_p1, %p2061_p0 }
   0x6   :  { %2069 = shalt.err (!%p2066_p2)
}
   0x7   :  { %s2070_s18 = scalar_lea.vmem %s27_s10, 12288  ;;  %p2075_p4 = scmp.lt.s32.totalorder %s27_s10, %s27_s10 }
   0x8   :  { %p2071_p3 = scmp.ne.s32.totalorder %s27_s10, %s2070_s18  ;;  %p2076_p5 = scmp.lt.s32.totalorder %s2070_s18, %s2070_s18 }
   0xa   :  { %p2077_p6 = por %p2076_p5, %p2075_p4 }
   0xc   :  { %p2078_p7 = pnand %p2077_p6, %p2071_p3 }
   0xe   :  { %2081 = shalt.err (!%p2078_p7)
}
   0xf   :  { %s2085_s19 = smov 256   ;;  %s2086_s20 = smov 16  }
  0x10   :  { %32 = dma.hbm_to_vmem [thread:$0]  %s2579_s3, 12288, %s27_s10, [#allocation3], %s2085_s19, %s2085_s19, %s2086_s20  }
  0x11   :  { %2082 = dma.done.wait [#allocation3], 12288  }
  0x12   :  { %2083 = vsyncadd [#allocation3], 4294955008  ;;  %v2087_v0 = vmov 0.0   ;;  %v1411_v1 = vld [vmem:[%s2577_s1 + $0x28] sm:$0xff]  ;;  %v1413_v2 = vld [vmem:[%s2577_s1 + $0x38] sm:$0xff]  ;;  %vm63_vm0 = vcmask 130048  }
  0x13   :  { %140 = vmatprep.mubr.f32.mxu0 %v2087_v0  ;;  %578 = vmatprep.mubr.f32.mxu1 %v2087_v0  ;;  %v1410_v3 = vld [vmem:[%s2577_s1 + $0x20] sm:$0xff]  ;;  %v1744_v4 = vpack.c.bf16 %v1413_v2, %v1411_v1  ;;  %v1412_v5 = vld [vmem:[%s2577_s1 + $0x30] sm:$0xff]  ;;  %v51_v6 = vld [vmem:[%s2577_s1 + $0x8] sm:$0xff]  ;;  %vm1303_vm7 = vcmask 261120  }
  0x14   :  { %v1746_v7 = vpack.c.bf16 %v1412_v5, %v1410_v3  ;;  %v53_v8 = vld [vmem:[%s2577_s1 + $0x18] sm:$0xff]  ;;  %v50_v9 = vld [vmem:[%s2577_s1] sm:$0xff]  ;;  %v52_v10 = vld [vmem:[%s2577_s1 + $0x10] sm:$0xff] }
  0x15   :  { %1745 = vmatprep.subr.bf16.mxu0 %v1744_v4  ;;  %v1748_v11 = vpack.c.bf16 %v53_v8, %v51_v6  ;;  %v54_v12 = vld [vmem:[%s2576_s0 + $0x1] sm:$0xff]  ;;  %v1750_v13 = vpack.c.bf16 %v52_v10, %v50_v9  ;;  %v1425_v15 = vld [vmem:[%s2577_s1 + $0x58] sm:$0xff]  ;;  %v55_v17 = vld [vmem:[%s2576_s0 + $0x9] sm:$0xff] }
  0x16   :  { %1747 = vmatpush1.bf16.msra.mxu0 %v1746_v7  ;;  %v1423_v14 = vld [vmem:[%s2577_s1 + $0x48] sm:$0xff]  ;;  %v485_v19 = vld [vmem:[#allocation2 + $0x118] sm:$0xff]  ;;  %v482_v20 = vld [vmem:[#allocation2 + $0x100] sm:$0xff] }
  0x17   :  { %1749 = vmatprep.subr.bf16.mxu0 %v1748_v11  ;;  %v1752_v16 = vpack.c.bf16 %v1425_v15, %v1423_v14  ;;  %v483_v18 = vld [vmem:[#allocation2 + $0x108] sm:$0xff]  ;;  %v484_v22 = vld [vmem:[#allocation2 + $0x110] sm:$0xff]  ;;  %v489_v24 = vld [vmem:[#allocation2 + $0x138] sm:$0xff] }
  0x18   :  { %v1756_v21 = vpack.c.bf16 %v485_v19, %v483_v18  ;;  %v487_v23 = vld [vmem:[#allocation2 + $0x128] sm:$0xff]  ;;  %v1758_v25 = vpack.c.bf16 %v484_v22, %v482_v20  ;;  %v486_v27 = vld [vmem:[#allocation2 + $0x120] sm:$0xff]  ;;  %v488_v28 = vld [vmem:[#allocation2 + $0x130] sm:$0xff]  ;;  %v392_v22 = vlaneseq }
  0x19   :  { %1414 = vmatmul.mubr.msk.f32.vlgmr.msra.gmra.mrb[0].mxu0 %vm63_vm0, %v54_v12  ;;  %v1760_v26 = vpack.c.bf16 %v489_v24, %v487_v23  ;;  %v56_v29 = vld [vmem:[%s2576_s0 + $0x19] sm:$0xff]  ;;  %v1762_v30 = vpack.c.bf16 %v488_v28, %v486_v27  ;;  %v57_v31 = vld [vmem:[%s2576_s0 + $0x21] sm:$0xff]  ;;  %v1424_v33 = vld [vmem:[%s2577_s1 + $0x50] sm:$0xff] }
  0x1a   :  { %1751 = vmatpush1.bf16.msra.mxu0 %v1750_v13  ;;  %146 = vmatprep.mubr.f32.mxu0 %v2087_v0  ;;  %v1422_v32 = vld [vmem:[%s2577_s1 + $0x40] sm:$0xff]  ;;  %v47_v36 = vld [vmem:[%s2576_s0 + $0x8] sm:$0xff]  ;;  %v48_v37 = vld [vmem:[%s2576_s0 + $0x18] sm:$0xff] }
  0x1b   :  { %1753 = vmatprep.subr.bf16.mxu0 %v1752_v16  ;;  %1757 = vmatprep.subr.bf16.mxu1 %v1756_v21  ;;  %v46_v34 = vld [vmem:[%s2576_s0] sm:$0xff]  ;;  %v1754_v35 = vpack.c.bf16 %v1424_v33, %v1422_v32  ;;  %v267_v40 = vld [vmem:[%s2576_s0 + $0xa] sm:$0xff]  ;;  %v493_v44 = vld [vmem:[#allocation2 + $0x158] sm:$0xff] }
  0x1c   :  { %1759 = vmatpush1.bf16.msra.mxu1 %v1758_v25  ;;  %v49_v38 = vld [vmem:[%s2576_s0 + $0x20] sm:$0xff]  ;;  %v491_v43 = vld [vmem:[#allocation2 + $0x148] sm:$0xff]  ;;  %v492_v47 = vld [vmem:[#allocation2 + $0x150] sm:$0xff] }
  0x1d   :  { %1415 = vmatmul.mubr.msk.f32.gmra.mrb[2].mxu0 %vm63_vm0, %v55_v17  ;;  %1761 = vmatprep.subr.bf16.mxu1 %v1760_v26  ;;  %v266_v39 = vld [vmem:[%s2576_s0 + $0x2] sm:$0xff]  ;;  %v268_v41 = vld [vmem:[%s2576_s0 + $0x1a] sm:$0xff]  ;;  %v1764_v45 = vpack.c.bf16 %v493_v44, %v491_v43  ;;  %v496_v53 = vld [vmem:[#allocation2 + $0x170] sm:$0xff]  ;;  %v2253_v26 = vshrl.u32 %v392_v22, 7 }
  0x1e   :  { %152 = vmatprep.mubr.f32.mxu0 %v2087_v0  ;;  %v269_v42 = vld [vmem:[%s2576_s0 + $0x22] sm:$0xff]  ;;  %v497_v50 = vld [vmem:[#allocation2 + $0x178] sm:$0xff]  ;;  %v500_v59 = vld [vmem:[#allocation2 + $0x190] sm:$0xff] }
  0x1f   :  { %v490_v46 = vld [vmem:[#allocation2 + $0x140] sm:$0xff]  ;;  %v495_v49 = vld [vmem:[#allocation2 + $0x168] sm:$0xff]  ;;  %v501_v56 = vld [vmem:[#allocation2 + $0x198] sm:$0xff]  ;;  %vm394_vm1 = vcmp.lt.s32.totalorder %v2253_v26, 7  ;;  %vm425_vm2 = vcmp.lt.s32.totalorder %v2253_v26, 2  ;;  %vm440_vm3 = vcmp.lt.s32.totalorder %v2253_v26, 6 }
  0x20   :  { %1763 = vmatpush1.bf16.msra.mxu1 %v1762_v30  ;;  %v1766_v48 = vpack.c.bf16 %v492_v47, %v490_v46  ;;  %v1768_v51 = vpack.c.bf16 %v497_v50, %v495_v49  ;;  %v494_v52 = vld [vmem:[#allocation2 + $0x160] sm:$0xff]  ;;  %v499_v55 = vld [vmem:[#allocation2 + $0x188] sm:$0xff]  ;;  %v505_v62 = vld [vmem:[#allocation2 + $0x1b8] sm:$0xff]  ;;  %vm419_vm4 = vcmp.ge.s32.totalorder %v2253_v26, 2  ;;  %vm873_vm6 = vcmp.lt.s32.totalorder %v2253_v26, 4 }
  0x21   :  { %1416 = vmatmul.mubr.msk.f32.gmra.mrb[4].mxu0 %vm63_vm0, %v56_v29  ;;  %1765 = vmatprep.subr.bf16.mxu1 %v1764_v45  ;;  %v1770_v54 = vpack.c.bf16 %v496_v53, %v494_v52  ;;  %v1772_v57 = vpack.c.bf16 %v501_v56, %v499_v55  ;;  %v498_v58 = vld [vmem:[#allocation2 + $0x180] sm:$0xff]  ;;  %v503_v61 = vld [vmem:[#allocation2 + $0x1a8] sm:$0xff]  ;;  %v504_v2 = vld [vmem:[#allocation2 + $0x1b0] sm:$0xff] }
  0x22   :  { %158 = vmatprep.mubr.f32.mxu0 %v2087_v0  ;;  %v1774_v60 = vpack.c.bf16 %v500_v59, %v498_v58  ;;  %v1776_v63 = vpack.c.bf16 %v505_v62, %v503_v61  ;;  %v502_v1 = vld [vmem:[#allocation2 + $0x1a0] sm:$0xff]  ;;  %v507_v4 = vld [vmem:[#allocation2 + $0x1c8] sm:$0xff]  ;;  %v509_v5 = vld [vmem:[#allocation2 + $0x1d8] sm:$0xff] }
  0x23   :  { %v1778_v3 = vpack.c.bf16 %v504_v2, %v502_v1  ;;  %v1780_v6 = vpack.c.bf16 %v509_v5, %v507_v4  ;;  %v506_v7 = vld [vmem:[#allocation2 + $0x1c0] sm:$0xff]  ;;  %v508_v8 = vld [vmem:[#allocation2 + $0x1d0] sm:$0xff]  ;;  %v511_v10 = vld [vmem:[#allocation2 + $0x1e8] sm:$0xff] }
  0x24   :  { %1767 = vmatpush1.bf16.msra.mxu1 %v1766_v48  ;;  %v1782_v9 = vpack.c.bf16 %v508_v8, %v506_v7  ;;  %v513_v11 = vld [vmem:[#allocation2 + $0x1f8] sm:$0xff]  ;;  %v510_v13 = vld [vmem:[#allocation2 + $0x1e0] sm:$0xff]  ;;  %v512_v14 = vld [vmem:[#allocation2 + $0x1f0] sm:$0xff] }
  0x25   :  { %1417 = vmatmul.mubr.msk.f32.gmra.mrb[6].mxu0 %vm63_vm0, %v57_v31  ;;  %1769 = vmatprep.subr.bf16.mxu1 %v1768_v51  ;;  %v1784_v12 = vpack.c.bf16 %v513_v11, %v511_v10  ;;  %v1786_v15 = vpack.c.bf16 %v512_v14, %v510_v13  ;;  %v450_v16 = vld [vmem:[#allocation2 + $0x8] sm:$0xff]  ;;  %v452_v17 = vld [vmem:[#allocation2 + $0x18] sm:$0xff]  ;;  %v853_v19 = vld [vmem:[%s2581_s5] sm:$0xff] }
  0x26   :  { %241 = vmatprep.mubr.f32.mxu0 %v2087_v0  ;;  %v1788_v18 = vpack.c.bf16 %v452_v17, %v450_v16  ;;  %v854_v20 = vld [vmem:[%s2581_s5 + $0x8] sm:$0xff]  ;;  %v449_v51 = vld [vmem:[#allocation2] sm:$0xff]  ;;  %v451_v52 = vld [vmem:[#allocation2 + $0x10] sm:$0xff] }
  0x27   :  { %v1884_v21 = vpack.c.bf16 %v854_v20, %v853_v19  ;;  %v454_v55 = vld [vmem:[#allocation2 + $0x28] sm:$0xff]  ;;  %v456_v56 = vld [vmem:[#allocation2 + $0x38] sm:$0xff]  ;;  %v453_v59 = vld [vmem:[#allocation2 + $0x20] sm:$0xff] }
  0x28   :  { %1771 = vmatpush1.bf16.msra.mxu1 %v1770_v54  ;;  %v1792_v58 = vpack.c.bf16 %v456_v56, %v454_v55  ;;  %v458_v62 = vld [vmem:[#allocation2 + $0x48] sm:$0xff]  ;;  %v459_v4 = vld [vmem:[#allocation2 + $0x50] sm:$0xff]  ;;  %v464_v7 = vld [vmem:[#allocation2 + $0x78] sm:$0xff] }
  0x29   :  { %1418 = vmatmul.mubr.msk.f32.vlgmr.msra.gmra.mrb[0].mxu0 %vm63_vm0, %v46_v34  ;;  %1773 = vmatprep.subr.bf16.mxu1 %v1772_v57  ;;  %v1790_v57 = vpack.c.bf16 %v451_v52, %v449_v51  ;;  %v461_v14 = vld [vmem:[#allocation2 + $0x60] sm:$0xff]  ;;  %v466_v19 = vld [vmem:[#allocation2 + $0x88] sm:$0xff]  ;;  %v468_v20 = vld [vmem:[#allocation2 + $0x98] sm:$0xff] }
  0x2a   :  { %1755 = vmatpush1.bf16.msra.mxu0 %v1754_v35  ;;  %247 = vmatprep.mubr.f32.mxu0 %v2087_v0  ;;  %v694_v55 = vld [vmem:[#allocation2 + $0x208] sm:$0xff]  ;;  %v696_v56 = vld [vmem:[#allocation2 + $0x218] sm:$0xff] }
  0x2b   :  { %1885 = vmatprep.subr.bf16.mxu0 %v1884_v21 }
  0x2c   :  { %1775 = vmatpush1.bf16.msra.mxu1 %v1774_v60  ;;  %v455_v60 = vld [vmem:[#allocation2 + $0x30] sm:$0xff] }
  0x2d   :  { %1419 = vmatmul.mubr.msk.f32.gmra.mrb[2].mxu0 %vm63_vm0, %v47_v36  ;;  %1777 = vmatprep.subr.bf16.mxu1 %v1776_v63  ;;  %v1430_v36 = vld [vmem:[%s2578_s2] ss:$0 sm:$0xff]  ;;  %v460_v63 = vld [vmem:[#allocation2 + $0x58] sm:$0xff]  ;;  %v1794_v1 = vpack.c.bf16 %v455_v60, %v453_v59  ;;  %v695_v60 = vld [vmem:[#allocation2 + $0x210] sm:$0xff] }
  0x2e   :  { %253 = vmatprep.mubr.f32.mxu0 %v2087_v0  ;;  %v1796_v2 = vpack.c.bf16 %v460_v63, %v458_v62  ;;  %v693_v59 = vld [vmem:[#allocation2 + $0x200] sm:$0xff]  ;;  %v700_v62 = vld [vmem:[#allocation2 + $0x238] sm:$0xff] }
  0x2f   :  { %v1822_v63 = vpack.c.bf16 %v695_v60, %v693_v59  ;;  %v861_v59 = vld [vmem:[%s2581_s5 + $0x40] sm:$0xff] }
  0x30   :  { %1779 = vmatpush1.bf16.msra.mxu1 %v1778_v3  ;;  %v457_v3 = vld [vmem:[#allocation2 + $0x40] sm:$0xff] }
  0x31   :  { %1420 = vmatmul.mubr.msk.f32.gmra.mrb[4].mxu0 %vm63_vm0, %v48_v37  ;;  %1781 = vmatprep.subr.bf16.mxu1 %v1780_v6  ;;  %v462_v6 = vld [vmem:[#allocation2 + $0x68] sm:$0xff] }
  0x32   :  { %259 = vmatprep.mubr.f32.mxu0 %v2087_v0  ;;  %v1800_v13 = vpack.c.bf16 %v464_v7, %v462_v6 }
  0x34   :  { %1783 = vmatpush1.bf16.msra.mxu1 %v1782_v9 }
  0x35   :  { %1421 = vmatmul.mubr.msk.f32.gmra.mrb[6].mxu0 %vm63_vm0, %v49_v38  ;;  %1785 = vmatprep.subr.bf16.mxu1 %v1784_v12  ;;  %v1798_v12 = vpack.c.bf16 %v459_v4, %v457_v3  ;;  %v699_v3 = vld [vmem:[#allocation2 + $0x230] sm:$0xff]  ;;  %v702_v4 = vld [vmem:[#allocation2 + $0x248] sm:$0xff] }
  0x36   :  { %351 = vmatprep.mubr.f32.mxu0 %v2087_v0 }
  0x38   :  { %1787 = vmatpush1.bf16.msra.mxu1 %v1786_v15  ;;  %v463_v15 = vld [vmem:[#allocation2 + $0x70] sm:$0xff] }
  0x39   :  { %1426 = vmatmul.mubr.msk.f32.vlgmr.msra.gmra.mrb[0].mxu0 %vm63_vm0, %v266_v39  ;;  %1789 = vmatprep.subr.bf16.mxu1 %v1788_v18 }
  0x3a   :  { %357 = vmatprep.mubr.f32.mxu0 %v2087_v0  ;;  %1887 = vmatpush3.bf16.msra.mxu0 %v1884_v21 }
  0x3d   :  { %1427 = vmatmul.mubr.msk.f32.gmra.mrb[2].mxu0 %vm63_vm0, %v267_v40 }
  0x3e   :  { %363 = vmatprep.mubr.f32.mxu0 %v2087_v0 }
  0x41   :  { %1428 = vmatmul.mubr.msk.f32.gmra.mrb[4].mxu0 %vm63_vm0, %v268_v41 }
  0x42   :  { %369 = vmatprep.mubr.f32.mxu0 %v2087_v0 }
  0x45   :  { %1429 = vmatmul.mubr.msk.f32.gmra.mrb[6].mxu0 %vm63_vm0, %v269_v42 }
 0x10c   :  { %v353_v23 = vpop.f32.mrb[0].mxu0 }
 0x10d   :  { %v355_v24 = vpop.f32.mrb[1].mxu0 }
 0x10e   :  { %v384_v25 = vmax.f32 %v353_v23, %v355_v24  ;;  %v1802_v24 = vpack.c.bf16 %v463_v15, %v461_v14  ;;  %v705_v14 = vld [vmem:[#allocation2 + $0x260] sm:$0xff]  ;;  %v707_v15 = vld [vmem:[#allocation2 + $0x270] sm:$0xff] }
 0x110   :  { %v359_v27 = vpop.f32.mrb[2].mxu0  ;;  %v388_v30 = vrot.slane %v384_v25, 1 }
 0x111   :  { %v361_v28 = vpop.f32.mrb[3].mxu0 }
 0x112   :  { %v385_v29 = vmax.f32 %v359_v27, %v361_v28  ;;  %v1804_v28 = vpack.c.bf16 %v468_v20, %v466_v19  ;;  %v712_v19 = vld [vmem:[#allocation2 + $0x298] sm:$0xff]  ;;  %v1834_v20 = vpack.c.bf16 %v707_v15, %v705_v14  ;;  %v867_v14 = vld [vmem:[%s2581_s5 + $0x70] sm:$0xff] }
 0x114   :  { %v389_v31 = vrot.slane %v385_v29, 1  ;;  %v365_v32 = vpop.f32.mrb[4].mxu0 }
 0x115   :  { %v367_v33 = vpop.f32.mrb[5].mxu0 }
 0x116   :  { %v397_v34 = vsel %vm394_vm1, %v388_v30, %v389_v31  ;;  %v386_v35 = vmax.f32 %v365_v32, %v367_v33  ;;  %v470_v33 = vld [vmem:[#allocation2 + $0xa8] sm:$0xff] }
 0x117   :  { %v399_v37 = vmax.f32 %v384_v25, %v397_v34  ;;  %v472_v34 = vld [vmem:[#allocation2 + $0xb8] sm:$0xff] }
 0x118   :  { %v390_v38 = vrot.slane %v386_v35, 1  ;;  %v371_v39 = vpop.f32.mrb[6].mxu0 }
 0x119   :  { %v373_v40 = vpop.f32.mrb[7].mxu0  ;;  %v410_v41 = vadd.f32 %v1430_v36, %v399_v37 }
 0x11a   :  { %v396_v42 = vsel %vm394_vm1, %v389_v31, %v390_v38  ;;  %v387_v43 = vmax.f32 %v371_v39, %v373_v40  ;;  %v1808_v40 = vpack.c.bf16 %v472_v34, %v470_v33 }
 0x11b   :  { %v400_v44 = vmax.f32 %v385_v29, %v396_v42  ;;  %2036 = vtanh.f32 %v410_v41  ;;  %v465_v29 = vld [vmem:[#allocation2 + $0x80] sm:$0xff]  ;;  %v471_v42 = vld [vmem:[#allocation2 + $0xb0] sm:$0xff] }
 0x11c   :  { %v391_v45 = vrot.slane %v387_v43, 1  ;;  %v469_v41 = vld [vmem:[#allocation2 + $0xa0] sm:$0xff] }
 0x11d   :  { %v411_v46 = vadd.f32 %v1430_v36, %v400_v44  ;;  %v476_v44 = vld [vmem:[#allocation2 + $0xd8] sm:$0xff] }
 0x11e   :  { %v395_v47 = vsel %vm394_vm1, %v390_v38, %v391_v45  ;;  %v398_v48 = vsel %vm394_vm1, %v391_v45, %v388_v30  ;;  %v467_v30 = vld [vmem:[#allocation2 + $0x90] sm:$0xff]  ;;  %v1810_v45 = vpack.c.bf16 %v471_v42, %v469_v41  ;;  %v724_v41 = vld [vmem:[#allocation2 + $0x2f8] sm:$0xff] }
 0x11f   :  { %v401_v49 = vmax.f32 %v386_v35, %v395_v47  ;;  %v402_v50 = vmax.f32 %v387_v43, %v398_v48  ;;  %2038 = vtanh.f32 %v411_v46  ;;  %v1806_v39 = vpack.c.bf16 %v467_v30, %v465_v29  ;;  %v474_v43 = vld [vmem:[#allocation2 + $0xc8] sm:$0xff]  ;;  %v473_v47 = vld [vmem:[#allocation2 + $0xc0] sm:$0xff]  ;;  %v475_v48 = vld [vmem:[#allocation2 + $0xd0] sm:$0xff] }
 0x120   :  { %v1812_v46 = vpack.c.bf16 %v476_v44, %v474_v43  ;;  %v1814_v51 = vpack.c.bf16 %v475_v48, %v473_v47  ;;  %v715_v29 = vld [vmem:[#allocation2 + $0x2b0] sm:$0xff]  ;;  %v718_v30 = vld [vmem:[#allocation2 + $0x2c8] sm:$0xff]  ;;  %v721_v43 = vld [vmem:[#allocation2 + $0x2e0] sm:$0xff] }
 0x121   :  { %v412_v53 = vadd.f32 %v1430_v36, %v401_v49  ;;  %v413_v54 = vadd.f32 %v1430_v36, %v402_v50  ;;  %v478_v49 = vld [vmem:[#allocation2 + $0xe8] sm:$0xff]  ;;  %v480_v50 = vld [vmem:[#allocation2 + $0xf8] sm:$0xff]  ;;  %v723_v44 = vld [vmem:[#allocation2 + $0x2f0] sm:$0xff] }
 0x122   :  { %v1816_v52 = vpack.c.bf16 %v480_v50, %v478_v49  ;;  %v855_v47 = vld [vmem:[%s2581_s5 + $0x10] sm:$0xff]  ;;  %v858_v49 = vld [vmem:[%s2581_s5 + $0x28] sm:$0xff] }
 0x123   :  { %2040 = vtanh.f32 %v412_v53  ;;  %v477_v53 = vld [vmem:[#allocation2 + $0xe0] sm:$0xff] }
 0x124   :  { %2042 = vtanh.f32 %v413_v54  ;;  %v479_v54 = vld [vmem:[#allocation2 + $0xf0] sm:$0xff] }
 0x125   :  { %v2037_v61 = vpop.eup %2036 }
 0x126   :  { %579 = vmatmul.mubr.f32.vlgmr.msra.gmra.mrb[0].mxu1 %v2037_v61  ;;  %v421_v8 = vrot.slane %v2037_v61, 6  ;;  %v436_v10 = vrot.slane %v2037_v61, 2  ;;  %v698_v61 = vld [vmem:[#allocation2 + $0x228] sm:$0xff] }
 0x127   :  { %1791 = vmatpush1.bf16.msra.mxu1 %v1790_v57  ;;  %584 = vmatprep.mubr.f32.mxu1 %v2087_v0  ;;  %v1818_v57 = vpack.c.bf16 %v479_v54, %v477_v53  ;;  %v859_v53 = vld [vmem:[%s2581_s5 + $0x30] sm:$0xff] }
 0x128   :  { %1793 = vmatprep.subr.bf16.mxu1 %v1792_v58  ;;  %v1820_v58 = vpack.c.bf16 %v696_v56, %v694_v55  ;;  %v860_v55 = vld [vmem:[%s2581_s5 + $0x38] sm:$0xff] }
 0x129   :  { %v2039_v5 = vpop.eup %2038  ;;  %v1896_v56 = vpack.c.bf16 %v860_v55, %v859_v53 }
 0x12a   :  { %585 = vmatmul.mubr.f32.gmra.mrb[2].mxu1 %v2039_v5  ;;  %v422_v9 = vrot.slane %v2039_v5, 6  ;;  %v437_v11 = vrot.slane %v2039_v5, 2  ;;  %v704_v5 = vld [vmem:[#allocation2 + $0x258] sm:$0xff] }
 0x12b   :  { %1795 = vmatpush1.bf16.msra.mxu1 %v1794_v1  ;;  %590 = vmatprep.mubr.f32.mxu1 %v2087_v0  ;;  %v1824_v1 = vpack.c.bf16 %v700_v62, %v698_v61  ;;  %v1828_v7 = vpack.c.bf16 %v704_v5, %v702_v4  ;;  %v862_v61 = vld [vmem:[%s2581_s5 + $0x48] sm:$0xff]  ;;  %v864_v4 = vld [vmem:[%s2581_s5 + $0x58] sm:$0xff] }
 0x12c   :  { %1797 = vmatprep.subr.bf16.mxu1 %v1796_v2  ;;  %v2273_v16 = vsel %vm425_vm2, %v421_v8, %v422_v9  ;;  %v2277_v17 = vsel %vm440_vm3, %v436_v10, %v437_v11  ;;  %v697_v2 = vld [vmem:[#allocation2 + $0x220] sm:$0xff]  ;;  %v1900_v62 = vpack.c.bf16 %v862_v61, %v861_v59 }
 0x12d   :  { %v2041_v18 = vpop.eup %2040  ;;  %v1826_v6 = vpack.c.bf16 %v699_v3, %v697_v2  ;;  %v863_v2 = vld [vmem:[%s2581_s5 + $0x50] sm:$0xff]  ;;  %v1456_v61 = vld [vmem:[%s2581_s5 + $0x120] sm:$0xff] }
 0x12e   :  { %v2043_v21 = vpop.eup %2042  ;;  %591 = vmatmul.mubr.f32.gmra.mrb[4].mxu1 %v2041_v18  ;;  %v423_v22 = vrot.slane %v2041_v18, 6  ;;  %v438_v23 = vrot.slane %v2041_v18, 2  ;;  %v710_v18 = vld [vmem:[#allocation2 + $0x288] sm:$0xff]  ;;  %v1904_v5 = vpack.c.bf16 %v864_v4, %v863_v2 }
 0x12f   :  { %1799 = vmatpush1.bf16.msra.mxu1 %v1798_v12  ;;  %596 = vmatprep.mubr.f32.mxu1 %v2087_v0  ;;  %v424_v25 = vrot.slane %v2043_v21, 6  ;;  %v439_v27 = vrot.slane %v2043_v21, 2 }
 0x130   :  { %1801 = vmatprep.subr.bf16.mxu1 %v1800_v13  ;;  %v2282_v31 = vsel %vm425_vm2, %v422_v9, %v423_v22  ;;  %v2286_v32 = vsel %vm440_vm3, %v437_v11, %v438_v23  ;;  %v703_v9 = vld [vmem:[#allocation2 + $0x250] sm:$0xff]  ;;  %v708_v11 = vld [vmem:[#allocation2 + $0x278] sm:$0xff] }
 0x131   :  { %v429_v35 = vsel %vm425_vm2, %v424_v25, %v421_v8  ;;  %v2292_v36 = vsel %vm425_vm2, %v423_v22, %v424_v25  ;;  %v2296_v37 = vsel %vm440_vm3, %v438_v23, %v439_v27  ;;  %v2300_v38 = vsel %vm440_vm3, %v439_v27, %v436_v10  ;;  %v701_v8 = vld [vmem:[#allocation2 + $0x240] sm:$0xff]  ;;  %v706_v10 = vld [vmem:[#allocation2 + $0x268] sm:$0xff]  ;;  %v711_v22 = vld [vmem:[#allocation2 + $0x290] sm:$0xff] }
 0x132   :  { %597 = vmatmul.mubr.f32.gmra.mrb[6].mxu1 %v2043_v21  ;;  %v1830_v12 = vpack.c.bf16 %v703_v9, %v701_v8  ;;  %v1832_v13 = vpack.c.bf16 %v708_v11, %v706_v10  ;;  %v709_v21 = vld [vmem:[#allocation2 + $0x280] sm:$0xff]  ;;  %v714_v23 = vld [vmem:[#allocation2 + $0x2a8] sm:$0xff] }
 0x133   :  { %1803 = vmatpush1.bf16.msra.mxu1 %v1802_v24  ;;  %667 = vmatprep.mubr.f32.mxu1 %v2087_v0  ;;  %v716_v24 = vld [vmem:[#allocation2 + $0x2b8] sm:$0xff]  ;;  %v1838_v25 = vpack.c.bf16 %v711_v22, %v709_v21  ;;  %v865_v8 = vld [vmem:[%s2581_s5 + $0x60] sm:$0xff]  ;;  %v866_v10 = vld [vmem:[%s2581_s5 + $0x68] sm:$0xff] }
 0x134   :  { %1805 = vmatprep.subr.bf16.mxu1 %v1804_v28  ;;  %v1840_v27 = vpack.c.bf16 %v716_v24, %v714_v23  ;;  %v713_v28 = vld [vmem:[#allocation2 + $0x2a0] sm:$0xff]  ;;  %v1908_v11 = vpack.c.bf16 %v866_v10, %v865_v8  ;;  %v1453_v23 = vld [vmem:[%s2581_s5 + $0x108] sm:$0xff] }
 0x135   :  { %v1842_v33 = vpack.c.bf16 %v715_v29, %v713_v28  ;;  %v1452_v21 = vld [vmem:[%s2581_s5 + $0x100] sm:$0xff] }
 0x136   :  { %v1916_v24 = vpack.c.bf16 %v1453_v23, %v1452_v21  ;;  %v1465_v21 = vld [vmem:[%s2581_s5 + $0x168] sm:$0xff]  ;;  %v1466_v23 = vld [vmem:[%s2581_s5 + $0x170] sm:$0xff] }
 0x137   :  { %1807 = vmatpush1.bf16.msra.mxu1 %v1806_v39  ;;  %v719_v39 = vld [vmem:[#allocation2 + $0x2d0] sm:$0xff] }
 0x138   :  { %1809 = vmatprep.subr.bf16.mxu1 %v1808_v40  ;;  %v722_v40 = vld [vmem:[#allocation2 + $0x2e8] sm:$0xff] }
 0x139   :  { %v1848_v42 = vpack.c.bf16 %v724_v41, %v722_v40 }
 0x13b   :  { %1811 = vmatpush1.bf16.msra.mxu1 %v1810_v45  ;;  %v1850_v45 = vpack.c.bf16 %v723_v44, %v721_v43  ;;  %v1435_v44 = vld [vmem:[%s2580_s4] ss:$0 sm:$0xff] }
 0x13c   :  { %1813 = vmatprep.subr.bf16.mxu1 %v1812_v46  ;;  %v418_v46 = vadd.s32 8, %v2253_v26  ;;  %v1462_v26 = vld [vmem:[%s2581_s5 + $0x150] sm:$0xff] }
 0x13e   :  { %vm435_vm5 = vcmp.lt.s32.totalorder %v418_v46, 14 }
 0x13f   :  { %1815 = vmatpush1.bf16.msra.mxu1 %v1814_v51  ;;  %v1438_v51 = vld [vmem:[%s2581_s5 + $0x90] sm:$0xff] }
 0x140   :  { %1817 = vmatprep.subr.bf16.mxu1 %v1816_v52  ;;  %v1439_v52 = vld [vmem:[%s2581_s5 + $0x98] sm:$0xff] }
 0x141   :  { %v1856_v54 = vpack.c.bf16 %v1439_v52, %v1438_v51 }
 0x143   :  { %1819 = vmatpush1.bf16.msra.mxu1 %v1818_v57  ;;  %v1440_v57 = vld [vmem:[%s2581_s5 + $0xa0] sm:$0xff] }
 0x144   :  { %1821 = vmatprep.subr.bf16.mxu1 %v1820_v58  ;;  %v1441_v58 = vld [vmem:[%s2581_s5 + $0xa8] sm:$0xff] }
 0x145   :  { %v1860_v60 = vpack.c.bf16 %v1441_v58, %v1440_v57  ;;  %v1454_v57 = vld [vmem:[%s2581_s5 + $0x110] sm:$0xff]  ;;  %v1455_v58 = vld [vmem:[%s2581_s5 + $0x118] sm:$0xff] }
 0x146   :  { %1431 = vmatmul.mubr.msk.f32.vlgmr.msra.gmra.mrb[0].mxu1 %vm419_vm4, %v429_v35  ;;  %v717_v35 = vld [vmem:[#allocation2 + $0x2c0] sm:$0xff]  ;;  %v1920_v59 = vpack.c.bf16 %v1455_v58, %v1454_v57 }
 0x147   :  { %1823 = vmatpush1.bf16.msra.mxu1 %v1822_v63  ;;  %673 = vmatprep.mubr.f32.mxu1 %v2087_v0  ;;  %v1442_v63 = vld [vmem:[%s2581_s5 + $0xb0] sm:$0xff] }
 0x148   :  { %1825 = vmatprep.subr.bf16.mxu1 %v1824_v1  ;;  %v1443_v1 = vld [vmem:[%s2581_s5 + $0xb8] sm:$0xff] }
 0x149   :  { %v1864_v3 = vpack.c.bf16 %v1443_v1, %v1442_v63 }
 0x14a   :  { %674 = vmatmul.mubr.f32.gmra.mrb[2].mxu1 %v2273_v16  ;;  %v1836_v16 = vpack.c.bf16 %v712_v19, %v710_v18  ;;  %v868_v18 = vld [vmem:[%s2581_s5 + $0x78] sm:$0xff] }
 0x14b   :  { %1827 = vmatpush1.bf16.msra.mxu1 %v1826_v6  ;;  %679 = vmatprep.mubr.f32.mxu1 %v2087_v0  ;;  %v1444_v6 = vld [vmem:[%s2581_s5 + $0xc0] sm:$0xff]  ;;  %v1912_v19 = vpack.c.bf16 %v868_v18, %v867_v14 }
 0x14c   :  { %1829 = vmatprep.subr.bf16.mxu1 %v1828_v7  ;;  %v1445_v7 = vld [vmem:[%s2581_s5 + $0xc8] sm:$0xff]  ;;  %v1460_v14 = vld [vmem:[%s2581_s5 + $0x140] sm:$0xff] }
 0x14d   :  { %v1868_v9 = vpack.c.bf16 %v1445_v7, %v1444_v6  ;;  %v1459_v6 = vld [vmem:[%s2581_s5 + $0x138] sm:$0xff] }
 0x14e   :  { %1432 = vmatmul.mubr.msk.f32.gmra.mrb[4].mxu1 %vm419_vm4, %v2282_v31  ;;  %v720_v31 = vld [vmem:[#allocation2 + $0x2d8] sm:$0xff] }
 0x14f   :  { %1831 = vmatpush1.bf16.msra.mxu1 %v1830_v12  ;;  %685 = vmatprep.mubr.f32.mxu1 %v2087_v0  ;;  %v1844_v34 = vpack.c.bf16 %v720_v31, %v718_v30  ;;  %v1446_v12 = vld [vmem:[%s2581_s5 + $0xd0] sm:$0xff] }
 0x150   :  { %1833 = vmatprep.subr.bf16.mxu1 %v1832_v13  ;;  %v1447_v13 = vld [vmem:[%s2581_s5 + $0xd8] sm:$0xff] }
 0x151   :  { %v1872_v15 = vpack.c.bf16 %v1447_v13, %v1446_v12 }
 0x152   :  { %686 = vmatmul.mubr.f32.gmra.mrb[6].mxu1 %v2292_v36  ;;  %v1846_v36 = vpack.c.bf16 %v719_v39, %v717_v35 }
 0x153   :  { %1835 = vmatpush1.bf16.msra.mxu1 %v1834_v20  ;;  %789 = vmatprep.mubr.f32.mxu1 %v2087_v0  ;;  %v1448_v20 = vld [vmem:[%s2581_s5 + $0xe0] sm:$0xff] }
 0x154   :  { %1837 = vmatprep.subr.bf16.mxu1 %v1836_v16  ;;  %v1449_v16 = vld [vmem:[%s2581_s5 + $0xe8] sm:$0xff] }
 0x155   :  { %v1876_v22 = vpack.c.bf16 %v1449_v16, %v1448_v20  ;;  %v1464_v16 = vld [vmem:[%s2581_s5 + $0x160] sm:$0xff] }
 0x157   :  { %1839 = vmatpush1.bf16.msra.mxu1 %v1838_v25  ;;  %v1450_v25 = vld [vmem:[%s2581_s5 + $0xf0] sm:$0xff] }
 0x158   :  { %1841 = vmatprep.subr.bf16.mxu1 %v1840_v27  ;;  %v1451_v27 = vld [vmem:[%s2581_s5 + $0xf8] sm:$0xff] }
 0x159   :  { %v1880_v28 = vpack.c.bf16 %v1451_v27, %v1450_v25  ;;  %v1468_v27 = vld [vmem:[%s2581_s5 + $0x180] sm:$0xff] }
 0x15b   :  { %1843 = vmatpush1.bf16.msra.mxu1 %v1842_v33 }
 0x15c   :  { %1845 = vmatprep.subr.bf16.mxu1 %v1844_v34 }
 0x15f   :  { %1847 = vmatpush1.bf16.msra.mxu1 %v1846_v36 }
 0x160   :  { %1849 = vmatprep.subr.bf16.mxu1 %v1848_v42 }
 0x163   :  { %1851 = vmatpush1.bf16.msra.mxu1 %v1850_v45 }
 0x166   :  { %790 = vmatmul.mubr.f32.vlgmr.msra.gmra.mrb[0].mxu1 %v2277_v17  ;;  %v856_v17 = vld [vmem:[%s2581_s5 + $0x18] sm:$0xff] }
 0x167   :  { %795 = vmatprep.mubr.f32.mxu1 %v2087_v0  ;;  %v1888_v48 = vpack.c.bf16 %v856_v17, %v855_v47 }
 0x169   :  { %1889 = vmatprep.subr.bf16.mxu0 %v1888_v48 }
 0x16a   :  { %1433 = vmatmul.mubr.msk.f32.gmra.mrb[2].mxu1 %vm435_vm5, %v2286_v32  ;;  %1891 = vmatpush3.bf16.msra.mxu0 %v1888_v48  ;;  %v1436_v32 = vld [vmem:[%s2581_s5 + $0x80] sm:$0xff] }
 0x16b   :  { %801 = vmatprep.mubr.f32.mxu1 %v2087_v0 }
 0x16e   :  { %802 = vmatmul.mubr.f32.gmra.mrb[4].mxu1 %v2296_v37  ;;  %v857_v37 = vld [vmem:[%s2581_s5 + $0x20] sm:$0xff] }
 0x16f   :  { %807 = vmatprep.mubr.f32.mxu1 %v2087_v0  ;;  %v1437_v0 = vld [vmem:[%s2581_s5 + $0x88] sm:$0xff]  ;;  %v1892_v50 = vpack.c.bf16 %v858_v49, %v857_v37 }
 0x171   :  { %1893 = vmatprep.subr.bf16.mxu0 %v1892_v50 }
 0x172   :  { %1434 = vmatmul.mubr.msk.f32.gmra.mrb[6].mxu1 %vm435_vm5, %v2300_v38  ;;  %v1852_v38 = vpack.c.bf16 %v1437_v0, %v1436_v32  ;;  %1895 = vmatpush3.bf16.msra.mxu0 %v1892_v50 }
 0x173   :  { %1897 = vmatprep.subr.bf16.mxu0 %v1896_v56 }
 0x174   :  { %1853 = vmatprep.subr.bf16.mxu1 %v1852_v38 }
 0x175   :  { %1855 = vmatpush3.bf16.msra.mxu1 %v1852_v38 }
 0x176   :  { %1857 = vmatprep.subr.bf16.mxu1 %v1856_v54  ;;  %1899 = vmatpush3.bf16.msra.mxu0 %v1896_v56 }
 0x177   :  { %1901 = vmatprep.subr.bf16.mxu0 %v1900_v62 }
 0x179   :  { %1859 = vmatpush3.bf16.msra.mxu1 %v1856_v54 }
 0x17a   :  { %1861 = vmatprep.subr.bf16.mxu1 %v1860_v60  ;;  %1903 = vmatpush3.bf16.msra.mxu0 %v1900_v62  ;;  %v1457_v62 = vld [vmem:[%s2581_s5 + $0x128] sm:$0xff] }
 0x17b   :  { %1905 = vmatprep.subr.bf16.mxu0 %v1904_v5 }
 0x17d   :  { %1863 = vmatpush3.bf16.msra.mxu1 %v1860_v60 }
 0x17e   :  { %1865 = vmatprep.subr.bf16.mxu1 %v1864_v3  ;;  %1907 = vmatpush3.bf16.msra.mxu0 %v1904_v5  ;;  %v1458_v5 = vld [vmem:[%s2581_s5 + $0x130] sm:$0xff] }
 0x17f   :  { %1909 = vmatprep.subr.bf16.mxu0 %v1908_v11 }
 0x181   :  { %1867 = vmatpush3.bf16.msra.mxu1 %v1864_v3  ;;  %v1924_v3 = vpack.c.bf16 %v1457_v62, %v1456_v61 }
 0x182   :  { %1869 = vmatprep.subr.bf16.mxu1 %v1868_v9  ;;  %1911 = vmatpush3.bf16.msra.mxu0 %v1908_v11  ;;  %v1928_v11 = vpack.c.bf16 %v1459_v6, %v1458_v5 }
 0x183   :  { %1913 = vmatprep.subr.bf16.mxu0 %v1912_v19 }
 0x185   :  { %1871 = vmatpush3.bf16.msra.mxu1 %v1868_v9 }
 0x186   :  { %1873 = vmatprep.subr.bf16.mxu1 %v1872_v15  ;;  %1915 = vmatpush3.bf16.msra.mxu0 %v1912_v19  ;;  %v1463_v19 = vld [vmem:[%s2581_s5 + $0x158] sm:$0xff] }
 0x187   :  { %1917 = vmatprep.subr.bf16.mxu0 %v1916_v24  ;;  %v1936_v20 = vpack.c.bf16 %v1463_v19, %v1462_v26 }
 0x189   :  { %1875 = vmatpush3.bf16.msra.mxu1 %v1872_v15  ;;  %v1461_v15 = vld [vmem:[%s2581_s5 + $0x148] sm:$0xff] }
 0x18a   :  { %1877 = vmatprep.subr.bf16.mxu1 %v1876_v22  ;;  %v1932_v18 = vpack.c.bf16 %v1461_v15, %v1460_v14 }
 0x18d   :  { %1879 = vmatpush3.bf16.msra.mxu1 %v1876_v22  ;;  %v1940_v22 = vpack.c.bf16 %v1465_v21, %v1464_v16 }
 0x18e   :  { %1881 = vmatprep.subr.bf16.mxu1 %v1880_v28 }
 0x191   :  { %1883 = vmatpush3.bf16.msra.mxu1 %v1880_v28  ;;  %v1469_v28 = vld [vmem:[%s2581_s5 + $0x188] sm:$0xff] }
 0x239   :  { %v791_v29 = vpop.f32.mrb[0].mxu1 }
 0x23a   :  { %v793_v30 = vpop.f32.mrb[1].mxu1 }
 0x23b   :  { %v822_v31 = vmax.f32 %v791_v29, %v793_v30  ;;  %v1948_v29 = vpack.c.bf16 %v1469_v28, %v1468_v27  ;;  %v1470_v30 = vld [vmem:[%s2581_s5 + $0x190] sm:$0xff] }
 0x23d   :  { %v797_v33 = vpop.f32.mrb[2].mxu1  ;;  %v826_v39 = vrot.slane %v822_v31, 2 }
 0x23e   :  { %v799_v34 = vpop.f32.mrb[3].mxu1 }
 0x23f   :  { %v823_v35 = vmax.f32 %v797_v33, %v799_v34  ;;  %v1472_v34 = vld [vmem:[%s2581_s5 + $0x1a0] sm:$0xff] }
 0x241   :  { %v827_v40 = vrot.slane %v823_v35, 2  ;;  %v803_v41 = vpop.f32.mrb[4].mxu1 }
 0x242   :  { %v805_v36 = vpop.f32.mrb[5].mxu1 }
 0x243   :  { %v832_v42 = vsel %vm440_vm3, %v826_v39, %v827_v40  ;;  %v824_v43 = vmax.f32 %v803_v41, %v805_v36  ;;  %v1475_v41 = vld [vmem:[%s2581_s5 + $0x1b8] sm:$0xff] }
 0x244   :  { %v834_v45 = vmax.f32 %v822_v31, %v832_v42  ;;  %v1471_v31 = vld [vmem:[%s2581_s5 + $0x198] sm:$0xff]  ;;  %v1476_v42 = vld [vmem:[%s2581_s5 + $0x1c0] sm:$0xff] }
 0x245   :  { %v828_v46 = vrot.slane %v824_v43, 2  ;;  %v809_v47 = vpop.f32.mrb[6].mxu1  ;;  %v1952_v33 = vpack.c.bf16 %v1471_v31, %v1470_v30 }
 0x246   :  { %v811_v17 = vpop.f32.mrb[7].mxu1  ;;  %v845_v48 = vadd.f32 %v1435_v44, %v834_v45  ;;  %v1478_v45 = vld [vmem:[%s2581_s5 + $0x1d0] sm:$0xff] }
 0x247   :  { %v831_v32 = vsel %vm440_vm3, %v827_v40, %v828_v46  ;;  %v825_v0 = vmax.f32 %v809_v47, %v811_v17  ;;  %v1474_v40 = vld [vmem:[%s2581_s5 + $0x1b0] sm:$0xff]  ;;  %v1480_v17 = vld [vmem:[%s2581_s5 + $0x1e0] sm:$0xff] }
 0x248   :  { %v835_v37 = vmax.f32 %v823_v35, %v831_v32  ;;  %2044 = vtanh.f32 %v845_v48  ;;  %v1473_v35 = vld [vmem:[%s2581_s5 + $0x1a8] sm:$0xff]  ;;  %v1960_v36 = vpack.c.bf16 %v1475_v41, %v1474_v40 }
 0x249   :  { %v829_v38 = vrot.slane %v825_v0, 2  ;;  %v1481_v48 = vld [vmem:[%s2581_s5 + $0x1e8] sm:$0xff] }
 0x24a   :  { %v846_v49 = vadd.f32 %v1435_v44, %v835_v37  ;;  %v1972_v32 = vpack.c.bf16 %v1481_v48, %v1480_v17  ;;  %v1483_v37 = vld [vmem:[%s2581_s5 + $0x1f8] sm:$0xff] }
 0x24b   :  { %v830_v50 = vsel %vm440_vm3, %v828_v46, %v829_v38  ;;  %v833_v51 = vsel %vm440_vm3, %v829_v38, %v826_v39  ;;  %v1956_v39 = vpack.c.bf16 %v1473_v35, %v1472_v34  ;;  %v1479_v46 = vld [vmem:[%s2581_s5 + $0x1d8] sm:$0xff] }
 0x24c   :  { %v836_v52 = vmax.f32 %v824_v43, %v830_v50  ;;  %v837_v53 = vmax.f32 %v825_v0, %v833_v51  ;;  %2046 = vtanh.f32 %v846_v49  ;;  %v1477_v43 = vld [vmem:[%s2581_s5 + $0x1c8] sm:$0xff]  ;;  %v1968_v47 = vpack.c.bf16 %v1479_v46, %v1478_v45  ;;  %v1482_v0 = vld [vmem:[%s2581_s5 + $0x1f0] sm:$0xff]  ;;  %v1292_v49 = vld [vmem:[%s2583_s7] sm:$0xff] }
 0x24d   :  { %v1976_v38 = vpack.c.bf16 %v1483_v37, %v1482_v0  ;;  %v1293_v50 = vld [vmem:[%s2583_s7 + $0x8] sm:$0xff] }
 0x24e   :  { %v847_v54 = vadd.f32 %v1435_v44, %v836_v52  ;;  %v848_v55 = vadd.f32 %v1435_v44, %v837_v53  ;;  %v1964_v44 = vpack.c.bf16 %v1477_v43, %v1476_v42  ;;  %v1980_v51 = vpack.c.bf16 %v1293_v50, %v1292_v49  ;;  %v1294_v52 = vld [vmem:[%s2583_s7 + $0x10] sm:$0xff]  ;;  %v1295_v53 = vld [vmem:[%s2583_s7 + $0x18] sm:$0xff] }
 0x250   :  { %2048 = vtanh.f32 %v847_v54  ;;  %1981 = vmatprep.subr.bf16.mxu1 %v1980_v51  ;;  %v1984_v54 = vpack.c.bf16 %v1295_v53, %v1294_v52 }
 0x251   :  { %2050 = vtanh.f32 %v848_v55 }
 0x252   :  { %v2430_v56 = vpop.eup %2044 }
 0x253   :  { %1648 = vmatprep.mubr.f32.mxu0 %v2430_v56  ;;  %v869_v63 = vrot.slane %v2430_v56, 4 }
 0x256   :  { %v2047_v60 = vpop.eup %2046 }
 0x257   :  { %1649 = vmatmul.mubr.f32.vlgmr.msra.gmra.mrb[8].mxu0 %v2047_v60  ;;  %v870_v1 = vrot.slane %v2047_v60, 4 }
 0x258   :  { %1919 = vmatpush3.bf16.msra.mxu0 %v1916_v24  ;;  %v1467_v24 = vld [vmem:[%s2581_s5 + $0x178] sm:$0xff] }
 0x259   :  { %v2449_v2 = vsel %vm873_vm6, %v869_v63, %v870_v1  ;;  %1921 = vmatprep.subr.bf16.mxu0 %v1920_v59  ;;  %v1944_v25 = vpack.c.bf16 %v1467_v24, %v1466_v23 }
 0x25a   :  { %v2049_v4 = vpop.eup %2048  ;;  %1610 = vmatprep.mubr.f32.mxu1 %v2449_v2 }
 0x25b   :  { %v2051_v7 = vpop.eup %2050  ;;  %1651 = vmatprep.mubr.f32.mxu0 %v2049_v4  ;;  %v871_v8 = vrot.slane %v2049_v4, 4 }
 0x25c   :  { %1923 = vmatpush3.bf16.msra.mxu0 %v1920_v59  ;;  %v872_v9 = vrot.slane %v2051_v7, 4 }
 0x25d   :  { %1652 = vmatmul.mubr.f32.gmra.mrb[10].mxu0 %v2051_v7  ;;  %v875_v10 = vsel %vm873_vm6, %v870_v1, %v871_v8  ;;  %1925 = vmatprep.subr.bf16.mxu0 %v1924_v3 }
 0x25e   :  { %1686 = vmatprep.mubr.f32.mxu0 %v2047_v60  ;;  %1611 = vmatmul.mubr.f32.vlgmr.msra.gmra.mrb[8].mxu1 %v875_v10  ;;  %v2462_v12 = vsel %vm873_vm6, %v871_v8, %v872_v9  ;;  %v2466_v13 = vsel %vm873_vm6, %v872_v9, %v869_v63  ;;  %v1484_v60 = vld [vmem:[%s2582_s6] ss:$0 sm:$0xff] }
 0x25f   :  { %1613 = vmatprep.mubr.f32.mxu1 %v2462_v12  ;;  %1983 = vmatpush3.bf16.msra.mxu1 %v1980_v51 }
 0x260   :  { %1927 = vmatpush3.bf16.msra.mxu0 %v1924_v3  ;;  %1985 = vmatprep.subr.bf16.mxu1 %v1984_v54 }
 0x261   :  { %1929 = vmatprep.subr.bf16.mxu0 %v1928_v11 }
 0x262   :  { %1614 = vmatmul.mubr.f32.gmra.mrb[10].mxu1 %v2466_v13 }
 0x263   :  { %1987 = vmatpush3.bf16.msra.mxu1 %v1984_v54 }
 0x264   :  { %1931 = vmatpush3.bf16.msra.mxu0 %v1928_v11 }
 0x265   :  { %1933 = vmatprep.subr.bf16.mxu0 %v1932_v18 }
 0x268   :  { %1935 = vmatpush3.bf16.msra.mxu0 %v1932_v18 }
 0x269   :  { %1937 = vmatprep.subr.bf16.mxu0 %v1936_v20 }
 0x26c   :  { %1939 = vmatpush3.bf16.msra.mxu0 %v1936_v20 }
 0x26d   :  { %1941 = vmatprep.subr.bf16.mxu0 %v1940_v22 }
 0x270   :  { %1943 = vmatpush3.bf16.msra.mxu0 %v1940_v22 }
 0x271   :  { %1945 = vmatprep.subr.bf16.mxu0 %v1944_v25 }
 0x274   :  { %1947 = vmatpush3.bf16.msra.mxu0 %v1944_v25 }
 0x275   :  { %1949 = vmatprep.subr.bf16.mxu0 %v1948_v29 }
 0x277   :  { %1687 = vmatmul.mubr.f32.vlgmr.msra.gmra.mrb[8].mxu0 %v2049_v4 }
 0x278   :  { %1689 = vmatprep.mubr.f32.mxu0 %v2051_v7  ;;  %1951 = vmatpush3.bf16.msra.mxu0 %v1948_v29 }
 0x279   :  { %1953 = vmatprep.subr.bf16.mxu0 %v1952_v33 }
 0x27b   :  { %1690 = vmatmul.mubr.f32.gmra.mrb[10].mxu0 %v2430_v56 }
 0x27c   :  { %1955 = vmatpush3.bf16.msra.mxu0 %v1952_v33  ;;  %1724 = vmatprep.mubr.f32.mxu0 %v875_v10 }
 0x27d   :  { %1957 = vmatprep.subr.bf16.mxu0 %v1956_v39 }
 0x280   :  { %1959 = vmatpush3.bf16.msra.mxu0 %v1956_v39 }
 0x281   :  { %1961 = vmatprep.subr.bf16.mxu0 %v1960_v36 }
 0x284   :  { %1963 = vmatpush3.bf16.msra.mxu0 %v1960_v36 }
 0x285   :  { %1965 = vmatprep.subr.bf16.mxu0 %v1964_v44 }
 0x288   :  { %1967 = vmatpush3.bf16.msra.mxu0 %v1964_v44 }
 0x289   :  { %1969 = vmatprep.subr.bf16.mxu0 %v1968_v47 }
 0x28c   :  { %1971 = vmatpush3.bf16.msra.mxu0 %v1968_v47 }
 0x28d   :  { %1973 = vmatprep.subr.bf16.mxu0 %v1972_v32 }
 0x290   :  { %1975 = vmatpush3.bf16.msra.mxu0 %v1972_v32 }
 0x291   :  { %1977 = vmatprep.subr.bf16.mxu0 %v1976_v38 }
 0x294   :  { %1979 = vmatpush3.bf16.msra.mxu0 %v1976_v38 }
 0x297   :  { %1725 = vmatmul.mubr.f32.vlgmr.msra.gmra.mrb[8].mxu0 %v2462_v12 }
 0x298   :  { %1727 = vmatprep.mubr.f32.mxu0 %v2466_v13  ;;  %v1485_v13 = vld [vmem:[%s2584_s8] ss:$0 sm:$0xff] }
 0x29b   :  { %1728 = vmatmul.mubr.f32.gmra.mrb[10].mxu0 %v2449_v2 }
 0x331   :  { %v1612_v55 = vpop.f32.mrb[8].mxu1 }
 0x332   :  { %v961_v56 = vpop.f32.mrb[9].mxu1 }
 0x335   :  { %v1615_v57 = vpop.f32.mrb[10].mxu1 }
 0x336   :  { %v971_v58 = vpop.f32.mrb[11].mxu1 }
 0x36a   :  { %v1726_v59 = vpop.f32.mrb[8].mxu0 }
 0x36b   :  { %v1988_v61 = vadd.f32 %v1726_v59, %v1612_v55  ;;  %v1254_v62 = vpop.f32.mrb[9].mxu0 }
 0x36c   :  { %v1989_v63 = vadd.f32 %v1254_v62, %v961_v56 }
 0x36d   :  { %v1285_v1 = vadd.f32 %v1988_v61, %v1484_v60 }
 0x36e   :  { %v1284_v2 = vadd.f32 %v1989_v63, %v1484_v60  ;;  %v1729_v3 = vpop.f32.mrb[10].mxu0 }
 0x36f   :  { %v1990_v4 = vadd.f32 %v1729_v3, %v1615_v57  ;;  %v1264_v5 = vpop.f32.mrb[11].mxu0 }
 0x370   :  { %2052 = vtanh.f32 %v1284_v2  ;;  %v1991_v6 = vadd.f32 %v1264_v5, %v971_v58 }
 0x371   :  { %2054 = vtanh.f32 %v1285_v1  ;;  %v1287_v7 = vadd.f32 %v1990_v4, %v1484_v60 }
 0x372   :  { %v1286_v8 = vadd.f32 %v1991_v6, %v1484_v60 }
 0x374   :  { %2056 = vtanh.f32 %v1286_v8 }
 0x375   :  { %2058 = vtanh.f32 %v1287_v7 }
 0x37a   :  { %v2053_v9 = vpop.eup %2052 }
 0x37b   :  { %v2055_v10 = vpop.eup %2054  ;;  %1738 = vmatprep.mubr.msk.f32.mxu1 %vm1303_vm7, %v2053_v9 }
 0x37c   :  { %1739 = vmatmul.mubr.msk.f32.vlgmr.msra.gmra.mrb[12].mxu1 %vm1303_vm7, %v2055_v10 }
 0x37e   :  { %v2057_v11 = vpop.eup %2056 }
 0x37f   :  { %v2059_v12 = vpop.eup %2058  ;;  %1741 = vmatprep.mubr.msk.f32.mxu1 %vm1303_vm7, %v2057_v11 }
 0x380   :  { %1742 = vmatmul.mubr.msk.f32.gmra.mrb[14].mxu1 %vm1303_vm7, %v2059_v12 }
 0x44f   :  { %v1740_v14 = vpop.f32.mrb[12].mxu1 }
 0x450   :  { %v1388_v15 = vadd.f32 %v1740_v14, %v1485_v13  ;;  %v1382_v18 = vpop.f32.mrb[13].mxu1 }
 0x451   :  { %v1383_v26 = vadd.f32 %v1485_v13, %v1382_v18 }
 0x452   :  { %1402 = vst [vmem:[%s2585_s9 + $0x8] sm:$0xff] %v1388_v15 }
 0x453   :  { %1401 = vst [vmem:[%s2585_s9] sm:$0xff] %v1383_v26  ;;  %v1743_v19 = vpop.f32.mrb[14].mxu1 }
 0x454   :  { %v1398_v20 = vadd.f32 %v1743_v19, %v1485_v13  ;;  %v1392_v16 = vpop.f32.mrb[15].mxu1 }
 0x455   :  { %v1393_v21 = vadd.f32 %v1485_v13, %v1392_v16 }
 0x456   :  { %1404 = vst [vmem:[%s2585_s9 + $0x18] sm:$0xff] %v1398_v20 }
 0x457   :  { %1403 = vst [vmem:[%s2585_s9 + $0x10] sm:$0xff] %v1393_v21 }
 0x458   :  { %1409 = vsyncpa [#allocation3], 1 }

</bundles_post_ra>
